<compile_context>
chip_gen: v5e
topology: v5e:2x2
jax: 0.10.0
libtpu: 0.0.40
codegen_flags: <defaults>
</compile_context>

<pallas_src>
import functools

import jax
import jax.numpy as jnp
from jax.experimental import pallas as pl
from jax.experimental.pallas import tpu as pltpu

NOISE_RATE = 0.1
_LANES = 1024          # lane-dense last dim (multiple of 128) -> unmasked vst
_SUBLANES = 8
_MAX_BLOCK_ROWS = 512  # (512, 1024) f32 block = 2 MiB; ~8 MiB VMEM double-buffered
                       # (fits default scoped limits on v5e / v6e / v7x)


def _ceil_div(a, b):
    return -(-a // b)


def _round_up(a, b):
    return _ceil_div(a, b) * b


def _mix32(x):
    # lowbias32 integer mixer (good avalanche on sequential counters),
    # bit-exact on int32: logical shifts emulated as arithmetic shift + mask,
    # multiplies wrap mod 2^32 like the unsigned original.
    x = x ^ ((x >> 16) & 0xFFFF)
    x = x * 0x7FEB352D
    x = x ^ ((x >> 15) & 0x1FFFF)
    x = x * (0x846CA68B - (1 << 32))
    x = x ^ ((x >> 16) & 0xFFFF)
    return x


def _salt_pepper_kernel(seed_ref, x_ref, o_ref, *, block_rows, lanes, noise_rate):
    shape = x_ref.shape
    # Global element index of every lane in this block = hash counter.
    r = jax.lax.broadcasted_iota(jnp.int32, shape, 0)
    c = jax.lax.broadcasted_iota(jnp.int32, shape, 1)
    idx = (pl.program_id(0) * block_rows + r) * lanes + c
    # Mix the user seed in on the scalar unit, then hash per element (VPU).
    h = _mix32(idx + seed_ref[0] * 1000003)

    # Bernoulli(noise_rate) test entirely in the integer domain (low 24 bits);
    # salt/pepper choice from bit 31, independent of the low bits.
    thresh = int(noise_rate * float(1 << 24))
    corrupt = (h & 0x00FFFFFF) < thresh
    salt = h < 0  # bit 31 set

    xv = x_ref[...]
    noise = jnp.where(salt, jnp.float32(1.0), jnp.float32(0.0)).astype(xv.dtype)
    o_ref[...] = jnp.where(corrupt, noise, xv)


def salt_pepper_noise(x, seed, noise_rate=NOISE_RATE):
    """Applies salt & pepper noise to `x` (any shape, float32)."""
    orig_shape = x.shape
    n = x.size

    # View the flat vector as a lane-dense (rows, _LANES) slab.  Block rows are
    # chosen so each block is ~2 MiB and padding stays small (only the ragged
    # tail tile is padded; no padding at all when shapes divide evenly).
    rows_needed = _ceil_div(n, _LANES)
    n_blocks = _ceil_div(rows_needed, _MAX_BLOCK_ROWS)
    block_rows = _round_up(_ceil_div(rows_needed, n_blocks), _SUBLANES)
    rows = n_blocks * block_rows
    n_pad = rows * _LANES

    flat = jnp.reshape(x, (n,))
    if n_pad != n:
        flat = jnp.pad(flat, (0, n_pad - n))
    slab = jnp.reshape(flat, (rows, _LANES))

    seed_arr = jnp.asarray([seed], dtype=jnp.int32)
    kernel = functools.partial(
        _salt_pepper_kernel,
        block_rows=block_rows, lanes=_LANES, noise_rate=noise_rate)

    out = pl.pallas_call(
        kernel,
        out_shape=jax.ShapeDtypeStruct(slab.shape, slab.dtype),
        grid_spec=pltpu.PrefetchScalarGridSpec(
            num_scalar_prefetch=1,
            grid=(n_blocks,),
            in_specs=[
                pl.BlockSpec((block_rows, _LANES), lambda i, seed: (i, 0)),
            ],
            out_specs=pl.BlockSpec((block_rows, _LANES), lambda i, seed: (i, 0)),
        ),
        compiler_params=pltpu.CompilerParams(
            # Stateless hash -> grid steps independent; shard across TCs (v7x).
            dimension_semantics=("parallel",),
        ),
    )(seed_arr, slab)

    out_flat = jnp.reshape(out, (n_pad,))
    if n_pad != n:
        out_flat = out_flat[:n]
    return jnp.reshape(out_flat, orig_shape)


if __name__ == "__main__":
    key = jax.random.PRNGKey(0)
    # NCHW input, like a typical image batch fed to this transform.
    x = jax.random.normal(key, (2, 4, 16, 16), dtype=jnp.float32)

    y = salt_pepper_noise(x, seed=1234, noise_rate=NOISE_RATE)
    y = jax.block_until_ready(y)

    # Shape/dtype preserved, noised positions are exactly 0/1, untouched
    # positions identical to the input, ~noise_rate fraction corrupted.
    assert y.shape == x.shape and y.dtype == x.dtype
    changed = y != x
    noised_vals = jnp.where(changed, y, 0.0)
    assert bool(jnp.all((noised_vals == 0.0) | (noised_vals == 1.0)))
    frac = float(jnp.mean(changed.astype(jnp.float32)))
    assert 0.0 < frac < 3.0 * NOISE_RATE

    print("KERNEL_OK")
</pallas_src>

<mosaic_0001>
module attributes {stable_mosaic.version = 11 : i64} {
  func.func @_salt_pepper_kernel(%arg0: i32, %arg1: memref<1xi32, #tpu.memory_space<smem>>, %arg2: memref<8x1024xf32, #tpu.memory_space<vmem>>, %arg3: memref<8x1024xf32, #tpu.memory_space<vmem>>) attributes {dimension_semantics = [#tpu.dimension_semantics<parallel>], iteration_bounds = array<i64: 1>, scalar_prefetch = 1 : i64, scratch_operands = 0 : i64, tpu.core_type = #tpu.core_type<tc>, window_params = [{transform_indices = @transform_0, window_bounds = array<i64: 8, 1024>}, {transform_indices = @transform_1, window_bounds = array<i64: 8, 1024>}]} {
    %0 = tpu.iota {dimensions = array<i32: 0>} : vector<8x1024xi32>
    %1 = tpu.iota {dimensions = array<i32: 1>} : vector<8x1024xi32>
    %c8_i32 = arith.constant 8 : i32
    %2 = arith.muli %arg0, %c8_i32 : i32
    %3 = vector.broadcast %2 : i32 to vector<8x1024xi32>
    %4 = arith.addi %3, %0 : vector<8x1024xi32>
    %c1024_i32 = arith.constant 1024 : i32
    %5 = vector.broadcast %c1024_i32 : i32 to vector<8x1024xi32>
    %6 = arith.muli %4, %5 : vector<8x1024xi32>
    %7 = arith.addi %6, %1 : vector<8x1024xi32>
    %c0 = arith.constant 0 : index
    %8 = memref.load %arg1[%c0] : memref<1xi32, #tpu.memory_space<smem>>
    %c1000003_i32 = arith.constant 1000003 : i32
    %9 = arith.muli %8, %c1000003_i32 : i32
    %10 = vector.broadcast %9 : i32 to vector<8x1024xi32>
    %11 = arith.addi %7, %10 : vector<8x1024xi32>
    %c16_i32 = arith.constant 16 : i32
    %12 = vector.broadcast %c16_i32 : i32 to vector<8x1024xi32>
    %13 = arith.shrsi %11, %12 : vector<8x1024xi32>
    %c65535_i32 = arith.constant 65535 : i32
    %14 = vector.broadcast %c65535_i32 : i32 to vector<8x1024xi32>
    %15 = arith.andi %13, %14 : vector<8x1024xi32>
    %16 = arith.xori %11, %15 : vector<8x1024xi32>
    %c2146121005_i32 = arith.constant 2146121005 : i32
    %17 = vector.broadcast %c2146121005_i32 : i32 to vector<8x1024xi32>
    %18 = arith.muli %16, %17 : vector<8x1024xi32>
    %c15_i32 = arith.constant 15 : i32
    %19 = vector.broadcast %c15_i32 : i32 to vector<8x1024xi32>
    %20 = arith.shrsi %18, %19 : vector<8x1024xi32>
    %c131071_i32 = arith.constant 131071 : i32
    %21 = vector.broadcast %c131071_i32 : i32 to vector<8x1024xi32>
    %22 = arith.andi %20, %21 : vector<8x1024xi32>
    %23 = arith.xori %18, %22 : vector<8x1024xi32>
    %c-2073254261_i32 = arith.constant -2073254261 : i32
    %24 = vector.broadcast %c-2073254261_i32 : i32 to vector<8x1024xi32>
    %25 = arith.muli %23, %24 : vector<8x1024xi32>
    %c16_i32_0 = arith.constant 16 : i32
    %26 = vector.broadcast %c16_i32_0 : i32 to vector<8x1024xi32>
    %27 = arith.shrsi %25, %26 : vector<8x1024xi32>
    %c65535_i32_1 = arith.constant 65535 : i32
    %28 = vector.broadcast %c65535_i32_1 : i32 to vector<8x1024xi32>
    %29 = arith.andi %27, %28 : vector<8x1024xi32>
    %30 = arith.xori %25, %29 : vector<8x1024xi32>
    %c16777215_i32 = arith.constant 16777215 : i32
    %31 = vector.broadcast %c16777215_i32 : i32 to vector<8x1024xi32>
    %32 = arith.andi %30, %31 : vector<8x1024xi32>
    %c1677721_i32 = arith.constant 1677721 : i32
    %33 = vector.broadcast %c1677721_i32 : i32 to vector<8x1024xi32>
    %34 = arith.cmpi slt, %32, %33 : vector<8x1024xi32>
    %c0_i32 = arith.constant 0 : i32
    %35 = vector.broadcast %c0_i32 : i32 to vector<8x1024xi32>
    %36 = arith.cmpi slt, %30, %35 : vector<8x1024xi32>
    %c0_2 = arith.constant 0 : index
    %c0_3 = arith.constant 0 : index
    %37 = vector.load %arg2[%c0_2, %c0_3] : memref<8x1024xf32, #tpu.memory_space<vmem>>, vector<8x1024xf32>
    %cst = arith.constant 1.000000e+00 : f32
    %cst_4 = arith.constant 0.000000e+00 : f32
    %38 = vector.broadcast %cst : f32 to vector<8x1024xf32>
    %39 = vector.broadcast %cst_4 : f32 to vector<8x1024xf32>
    %40 = arith.select %36, %38, %39 : vector<8x1024xi1>, vector<8x1024xf32>
    %41 = arith.select %34, %40, %37 : vector<8x1024xi1>, vector<8x1024xf32>
    %c0_5 = arith.constant 0 : index
    %c0_6 = arith.constant 0 : index
    %42 = vector.load %arg3[%c0_5, %c0_6] : memref<8x1024xf32, #tpu.memory_space<vmem>>, vector<8x1024xf32>
    tpu.vector_store %arg3[%c0_5, %c0_6], %41 {strides = array<i32>} : memref<8x1024xf32, #tpu.memory_space<vmem>>, vector<8x1024xf32>,
    return
  }
  func.func @transform_0(%arg0: i32, %arg1: memref<1xi32, #tpu.memory_space<smem>>) -> (i32, i32) {
    %c0_i32 = arith.constant 0 : i32
    %c0_i32_0 = arith.constant 0 : i32
    return %arg0, %c0_i32 : i32, i32
  }
  func.func @transform_1(%arg0: i32, %arg1: memref<1xi32, #tpu.memory_space<smem>>) -> (i32, i32) {
    %c0_i32 = arith.constant 0 : i32
    %c0_i32_0 = arith.constant 0 : i32
    return %arg0, %c0_i32 : i32, i32
  }
}

</mosaic_0001>

<bundles_post_ra>
// kernel: tpu_custom_call.1
= control target key start
LH: loop header
LB: loop body
LE: loop exit
PB: predicated region body
PF: predicated region fallthrough
CT: control target
= control target key end

     0   :  { %8 = vsyncpa [#allocation5], 0  ;;  %s329_s0 = inlined_call_operand.<no memory space> [shape: s32[1], index: 0, kind: input, shape index: {}]   ;;  %s330_s1 = inlined_call_operand.hbm [shape: f32[8,1024], index: 1, kind: input, shape index: {}]   ;;  %s331_s2 = inlined_call_operand.hbm [shape: f32[8,1024], index: 2, kind: output, shape index: {}]  }
   0x1   :  { %9 = vsyncpa [#allocation6], 0  ;;  %s15_s11 = sshll.u32 %s330_s1, 4  ;;  %s299_s12 = smov [#allocation4]   ;;  %s16_s11 = int_to_ptr.hbm [resolvable:$true] %s15_s11 }
   0x2   :  { %s17_s13 = sshll.u32 %s299_s12, 4  ;;  %s18_s13 = int_to_ptr.vmem [resolvable:$true] %s17_s13 }
   0x3   :  { %20 = dma.hbm_to_vmem [thread:$0]  %s16_s11, 1024, %s18_s13, [#allocation5]  }
   0x4   :  { %295 = dma.done.wait [#allocation5], 1024  }
   0x5   :  { %296 = vsyncadd [#allocation5], 4294966272  ;;  %v25_v0 = vlaneseq  ;;  %s49_s16 = smul.u32 1000003, %s329_s0  ;;  %s300_s0 = smov [#allocation7]  }
   0x6   :  { %s323_s1 = sshll.u32 %s300_s0, 4  ;;  %s210_s19 = sshll.u32 %s331_s2, 4  ;;  %s209_s1 = int_to_ptr.vmem [resolvable:$true] %s323_s1  ;;  %s211_s19 = int_to_ptr.hbm [resolvable:$true] %s210_s19 }
   0x7   :  { %v26_v1 = vshrl.u32 %v25_v0, 7  ;;  %v28_v2 = vand.u32 127, %v25_v0  ;;  %v50_v3 = vstv %s49_s16 }
   0x9   :  { %v39_v4 = vmul.u32 1024, %v26_v1  ;;  %v29_v5 = vadd.s32 128, %v28_v2  ;;  %v30_v6 = vadd.s32 256, %v28_v2  ;;  %v31_v7 = vadd.s32 384, %v28_v2 }
   0xa   :  { %v32_v8 = vadd.s32 512, %v28_v2  ;;  %v33_v9 = vadd.s32 640, %v28_v2  ;;  %v34_v10 = vadd.s32 768, %v28_v2  ;;  %v35_v11 = vadd.s32 896, %v28_v2 }
   0xb   :  { %v40_v12 = vadd.s32 %v39_v4, %v28_v2  ;;  %v41_v13 = vadd.s32 %v39_v4, %v29_v5  ;;  %v42_v14 = vadd.s32 %v39_v4, %v30_v6  ;;  %v43_v15 = vadd.s32 %v39_v4, %v31_v7 }
   0xc   :  { %v44_v16 = vadd.s32 %v39_v4, %v32_v8  ;;  %v45_v17 = vadd.s32 %v39_v4, %v33_v9  ;;  %v46_v18 = vadd.s32 %v39_v4, %v34_v10  ;;  %v47_v19 = vadd.s32 %v39_v4, %v35_v11 }
   0xd   :  { %v51_v20 = vadd.s32 %v50_v3, %v40_v12  ;;  %v52_v21 = vadd.s32 %v50_v3, %v41_v13  ;;  %v53_v22 = vadd.s32 %v50_v3, %v42_v14  ;;  %v54_v23 = vadd.s32 %v50_v3, %v43_v15 }
   0xe   :  { %v55_v24 = vadd.s32 %v50_v3, %v44_v16  ;;  %v56_v25 = vadd.s32 %v50_v3, %v45_v17  ;;  %v57_v26 = vadd.s32 %v50_v3, %v46_v18  ;;  %v58_v27 = vadd.s32 %v50_v3, %v47_v19 }
   0xf   :  { %v220_v28 = vshrl.u32 %v51_v20, 16  ;;  %v221_v29 = vshrl.u32 %v52_v21, 16  ;;  %v222_v30 = vshrl.u32 %v53_v22, 16  ;;  %v223_v31 = vshrl.u32 %v54_v23, 16 }
  0x10   :  { %v224_v32 = vshrl.u32 %v55_v24, 16  ;;  %v225_v33 = vshrl.u32 %v56_v25, 16  ;;  %v226_v34 = vshrl.u32 %v57_v26, 16  ;;  %v227_v35 = vshrl.u32 %v58_v27, 16 }
  0x11   :  { %v75_v36 = vxor.u32 %v220_v28, %v51_v20  ;;  %v76_v37 = vxor.u32 %v221_v29, %v52_v21  ;;  %v77_v38 = vxor.u32 %v222_v30, %v53_v22  ;;  %v78_v39 = vxor.u32 %v223_v31, %v54_v23  ;;  %v171_v22 = vld [vmem:[#allocation4] sm:$0xff]  ;;  %v172_v23 = vld [vmem:[#allocation4 + $0x8] sm:$0xff] }
  0x12   :  { %v79_v40 = vxor.u32 %v224_v32, %v55_v24  ;;  %v80_v41 = vxor.u32 %v225_v33, %v56_v25  ;;  %v81_v42 = vxor.u32 %v226_v34, %v57_v26  ;;  %v82_v43 = vxor.u32 %v227_v35, %v58_v27  ;;  %v173_v34 = vld [vmem:[#allocation4 + $0x10] sm:$0xff] }
  0x13   :  { %v83_v44 = vmul.u32 2146121005, %v75_v36  ;;  %v84_v45 = vmul.u32 2146121005, %v76_v37  ;;  %v85_v46 = vmul.u32 2146121005, %v77_v38 }
  0x14   :  { %v86_v47 = vmul.u32 2146121005, %v78_v39  ;;  %v87_v48 = vmul.u32 2146121005, %v79_v40  ;;  %v88_v49 = vmul.u32 2146121005, %v80_v41 }
  0x15   :  { %v228_v50 = vshrl.u32 %v83_v44, 15  ;;  %v229_v51 = vshrl.u32 %v84_v45, 15  ;;  %v230_v52 = vshrl.u32 %v85_v46, 15  ;;  %v89_v53 = vmul.u32 2146121005, %v81_v42  ;;  %v174_v39 = vld [vmem:[#allocation4 + $0x18] sm:$0xff] }
  0x16   :  { %v231_v54 = vshrl.u32 %v86_v47, 15  ;;  %v232_v55 = vshrl.u32 %v87_v48, 15  ;;  %v233_v56 = vshrl.u32 %v88_v49, 15  ;;  %v90_v57 = vmul.u32 2146121005, %v82_v43  ;;  %v175_v40 = vld [vmem:[#allocation4 + $0x20] sm:$0xff] }
  0x17   :  { %v107_v58 = vxor.u32 %v228_v50, %v83_v44  ;;  %v108_v59 = vxor.u32 %v229_v51, %v84_v45  ;;  %v109_v60 = vxor.u32 %v230_v52, %v85_v46  ;;  %v234_v61 = vshrl.u32 %v89_v53, 15  ;;  %v176_v44 = vld [vmem:[#allocation4 + $0x28] sm:$0xff] }
  0x18   :  { %v110_v62 = vxor.u32 %v231_v54, %v86_v47  ;;  %v111_v63 = vxor.u32 %v232_v55, %v87_v48  ;;  %v112_v0 = vxor.u32 %v233_v56, %v88_v49  ;;  %v235_v1 = vshrl.u32 %v90_v57, 15  ;;  %v177_v49 = vld [vmem:[#allocation4 + $0x30] sm:$0xff]  ;;  %v178_v56 = vld [vmem:[#allocation4 + $0x38] sm:$0xff] }
  0x19   :  { %v115_v2 = vmul.u32 2221713035, %v107_v58  ;;  %v116_v3 = vmul.u32 2221713035, %v108_v59  ;;  %v117_v4 = vmul.u32 2221713035, %v109_v60  ;;  %v113_v5 = vxor.u32 %v234_v61, %v89_v53 }
  0x1a   :  { %v118_v6 = vmul.u32 2221713035, %v110_v62  ;;  %v119_v7 = vmul.u32 2221713035, %v111_v63  ;;  %v120_v8 = vmul.u32 2221713035, %v112_v0  ;;  %v114_v9 = vxor.u32 %v235_v1, %v90_v57 }
  0x1b   :  { %v236_v10 = vshrl.u32 %v115_v2, 16  ;;  %v237_v11 = vshrl.u32 %v116_v3, 16  ;;  %v238_v12 = vshrl.u32 %v117_v4, 16  ;;  %v121_v13 = vmul.u32 2221713035, %v113_v5 }
  0x1c   :  { %v239_v14 = vshrl.u32 %v118_v6, 16  ;;  %v240_v15 = vshrl.u32 %v119_v7, 16  ;;  %v241_v16 = vshrl.u32 %v120_v8, 16  ;;  %v122_v17 = vmul.u32 2221713035, %v114_v9 }
  0x1d   :  { %v139_v18 = vxor.u32 %v236_v10, %v115_v2  ;;  %v140_v19 = vxor.u32 %v237_v11, %v116_v3  ;;  %v141_v20 = vxor.u32 %v238_v12, %v117_v4  ;;  %v242_v21 = vshrl.u32 %v121_v13, 16 }
  0x1e   :  { %v142_v24 = vxor.u32 %v239_v14, %v118_v6  ;;  %v143_v25 = vxor.u32 %v240_v15, %v119_v7  ;;  %v144_v26 = vxor.u32 %v241_v16, %v120_v8  ;;  %v243_v27 = vshrl.u32 %v122_v17, 16 }
  0x1f   :  { %v147_v28 = vand.u32 16777215, %v139_v18  ;;  %vm163_vm0 = vcmp.lt.s32.totalorder %v139_v18, 0  ;;  %v148_v29 = vand.u32 16777215, %v140_v19  ;;  %vm164_vm1 = vcmp.lt.s32.totalorder %v140_v19, 0 }
  0x20   :  { %v301_v30 = vmov 0.0   ;;  %v149_v33 = vand.u32 16777215, %v141_v20  ;;  %vm165_vm2 = vcmp.lt.s32.totalorder %v141_v20, 0  ;;  %vm166_vm5 = vcmp.lt.s32.totalorder %v142_v24, 0 }
  0x21   :  { %v179_v31 = vsel %vm163_vm0, 1.0, %v301_v30  ;;  %v180_v32 = vsel %vm164_vm1, 1.0, %v301_v30  ;;  %vm155_vm3 = vcmp.lt.s32.totalorder %v147_v28, 1677721  ;;  %vm156_vm4 = vcmp.lt.s32.totalorder %v148_v29, 1677721 }
  0x22   :  { %v181_v35 = vsel %vm165_vm2, 1.0, %v301_v30  ;;  %v187_v36 = vsel %vm155_vm3, %v179_v31, %v171_v22  ;;  %v188_v37 = vsel %vm156_vm4, %v180_v32, %v172_v23  ;;  %vm157_vm6 = vcmp.lt.s32.totalorder %v149_v33, 1677721 }
  0x23   :  { %v150_v38 = vand.u32 16777215, %v142_v24  ;;  %195 = vst [vmem:[#allocation7] sm:$0xff] %v187_v36  ;;  %v189_v41 = vsel %vm157_vm6, %v181_v35, %v173_v34  ;;  %v182_v42 = vsel %vm166_vm5, 1.0, %v301_v30  ;;  %v151_v43 = vand.u32 16777215, %v143_v25 }
  0x24   :  { %vm167_vm7 = vcmp.lt.s32.totalorder %v143_v25, 0  ;;  %196 = vst [vmem:[#allocation7 + $0x8] sm:$0xff] %v188_v37  ;;  %v152_v46 = vand.u32 16777215, %v144_v26  ;;  %v145_v47 = vxor.u32 %v242_v21, %v121_v13  ;;  %vm168_vm10 = vcmp.lt.s32.totalorder %v144_v26, 0 }
  0x25   :  { %vm158_vm8 = vcmp.lt.s32.totalorder %v150_v38, 1677721  ;;  %v183_v45 = vsel %vm167_vm7, 1.0, %v301_v30  ;;  %197 = vst [vmem:[#allocation7 + $0x10] sm:$0xff] %v189_v41  ;;  %vm159_vm9 = vcmp.lt.s32.totalorder %v151_v43, 1677721  ;;  %v146_v50 = vxor.u32 %v243_v27, %v122_v17 }
  0x26   :  { %v190_v48 = vsel %vm158_vm8, %v182_v42, %v174_v39  ;;  %v191_v51 = vsel %vm159_vm9, %v183_v45, %v175_v40  ;;  %vm160_vm11 = vcmp.lt.s32.totalorder %v152_v46, 1677721  ;;  %v184_v52 = vsel %vm168_vm10, 1.0, %v301_v30 }
  0x27   :  { %198 = vst [vmem:[#allocation7 + $0x18] sm:$0xff] %v190_v48  ;;  %v153_v53 = vand.u32 16777215, %v145_v47  ;;  %v192_v54 = vsel %vm160_vm11, %v184_v52, %v176_v44  ;;  %vm169_vm12 = vcmp.lt.s32.totalorder %v145_v47, 0  ;;  %v154_v55 = vand.u32 16777215, %v146_v50 }
  0x28   :  { %199 = vst [vmem:[#allocation7 + $0x20] sm:$0xff] %v191_v51  ;;  %vm170_vm13 = vcmp.lt.s32.totalorder %v146_v50, 0  ;;  %v185_v57 = vsel %vm169_vm12, 1.0, %v301_v30 }
  0x29   :  { %200 = vst [vmem:[#allocation7 + $0x28] sm:$0xff] %v192_v54  ;;  %vm161_vm14 = vcmp.lt.s32.totalorder %v153_v53, 1677721  ;;  %v186_v58 = vsel %vm170_vm13, 1.0, %v301_v30  ;;  %vm162_vm15 = vcmp.lt.s32.totalorder %v154_v55, 1677721 }
  0x2a   :  { %v193_v59 = vsel %vm161_vm14, %v185_v57, %v177_v49  ;;  %v194_v60 = vsel %vm162_vm15, %v186_v58, %v178_v56 }
  0x2b   :  { %201 = vst [vmem:[#allocation7 + $0x30] sm:$0xff] %v193_v59 }
  0x2c   :  { %202 = vst [vmem:[#allocation7 + $0x38] sm:$0xff] %v194_v60 }
  0x2d   :  { %213 = dma.vmem_to_hbm [thread:$0]  %s209_s1, 1024, %s211_s19, [#allocation6]  }
  0x2e   :  { %297 = dma.done.wait [#allocation6], 1024  }
  0x2f   :  { %298 = vsyncadd [#allocation6], 4294966272 }
  0x30   :  { %218 = vsyncpa [#allocation5], 1 }
  0x31   :  { %219 = vsyncpa [#allocation6], 1 }

</bundles_post_ra>
